<compile_context>
chip_gen: v5e
topology: v5e:2x2
jax: 0.10.0
libtpu: 0.0.40
codegen_flags: <defaults>
</compile_context>

<pallas_src>
import functools

import numpy as np
import jax
import jax.numpy as jnp
from jax.experimental import pallas as pl
from jax.experimental.pallas import tpu as pltpu


def dct_mat(size):
    m = [[(np.sqrt(1.0 / size) if i == 0 else np.sqrt(2.0 / size))
          * np.cos((j + 0.5) * np.pi * i / size)
          for j in range(size)] for i in range(size)]
    return np.asarray(m, dtype=np.float32)


@functools.lru_cache(maxsize=None)
def _dct_kron(size):
    """K = D (x) D for row-major vec: vec(D A D^T) = vec(A) @ K^T, vec(D^T A D) = vec(A) @ K.

    Built once on the host (numpy) and cached; at S=16 it is a 256 KiB f32 constant.
    TODO(synk): this grows as S^4 -- past S~45 it no longer fits v7x's default
    scoped VMEM when double-buffered; switch to the separable per-plane
    D @ A @ D^T form (O(S^2) weights) for large spatial sizes.
    """
    d = dct_mat(size)
    return jnp.asarray(np.kron(d, d))


def _fam_head_kernel(x_ref, k_ref, w_ref, gb_ref, out_ref, *,
                     n_batch, n_chan, inv_count, eps):
    # x_ref:  (C*N, S*S)  batch-major flattened planes (row = n*C + c)
    # k_ref:  (S*S, S*S)  K = D (x) D  (single operator for forward & inverse DCT)
    # w_ref:  (C*N, C*N)  I_N (x) W_eff  (folded avg/max 1x1 conv, batch-major)
    # gb_ref: (C*N, 2)    column 0 = gamma per row, column 1 = beta per row
    x = x_ref[...]
    k = k_ref[...]

    # ---- forward 2-D DCT of every (n, c) plane: x @ K^T, one 256-wide MXU dot ----
    xf = jax.lax.dot_general(x, k, (((1,), (1,)), ((), ())),
                             preferred_element_type=jnp.float32)        # (CN, P)

    # ---- pools are identity; folded 1x1 conv over channels (one tiny MXU dot) ----
    # TODO(synk): this K=C contraction uses ~2% of the MXU; it could move to VPU
    # FMAs on sublane slices, but a single small dot keeps lowering robust.
    att = jnp.dot(w_ref[...], xf, preferred_element_type=jnp.float32)   # (CN, P)

    # ---- BatchNorm2d, train-mode biased stats over (N, H, W) — VPU/XLU only ----
    row_sum = jnp.sum(att, axis=-1, keepdims=True)                      # (CN, 1)
    ch_sum = row_sum[0:n_chan, :]
    for n in range(1, n_batch):                   # static loop: N-1 sublane adds
        ch_sum = ch_sum + row_sum[n * n_chan:(n + 1) * n_chan, :]
    mean = jnp.concatenate([ch_sum * inv_count] * n_batch, axis=0)      # (CN, 1)

    diff = att - mean                             # centered (two-pass variance)
    row_ss = jnp.sum(diff * diff, axis=-1, keepdims=True)               # (CN, 1)
    ch_ss = row_ss[0:n_chan, :]
    for n in range(1, n_batch):
        ch_ss = ch_ss + row_ss[n * n_chan:(n + 1) * n_chan, :]
    var = jnp.concatenate([ch_ss * inv_count] * n_batch, axis=0)        # (CN, 1)

    scale = jax.lax.rsqrt(var + eps) * gb_ref[:, 0:1]                   # (CN, 1)
    a = jax.nn.sigmoid(diff * scale + gb_ref[:, 1:2])                   # (CN, P)

    # ---- inverse 2-D DCT (a @ K) -> residual -> sigmoid, lane-dense store ----
    y = jnp.dot(a, k, preferred_element_type=jnp.float32)               # (CN, P)
    out_ref[...] = jax.nn.sigmoid(y + x).astype(out_ref.dtype)


def _fam_head_forward(x, conv_w, gamma, beta, eps=1e-5):
    N, C, H, W = x.shape
    assert H == W, "FAM_Head operates on square feature maps"
    S = H
    assert conv_w.shape == (C, 2 * C)
    CN, P = N * C, S * S
    f32 = jnp.float32

    k = _dct_kron(S)                                     # cached (P, P) constant

    # adaptive_{avg,max}_pool2d to (S, S) on an (S, S) map is the identity, so
    # the channel concat duplicates x_freq: fold the two weight halves together.
    w_eff = (conv_w[:, :C] + conv_w[:, C:]).astype(f32)  # (C, C)
    # Batch-major rows -> per-batch channel mixing is block-diagonal.
    w_big = jnp.kron(jnp.eye(N, dtype=f32), w_eff)       # (CN, CN)

    # gamma/beta expanded to per-row values, merged into one small tile.
    gb_rows = jnp.stack([jnp.tile(gamma.astype(f32), N),
                         jnp.tile(beta.astype(f32), N)], axis=1)        # (CN, 2)

    x_flat = x.reshape(CN, P)                            # free view (batch-major)

    kernel = functools.partial(_fam_head_kernel, n_batch=N, n_chan=C,
                               inv_count=1.0 / float(N * P), eps=float(eps))
    # TODO(synk): at production sizes, tile the grid over CN rows (a "parallel"
    # axis, K BlockSpec held constant / Buffered(1)) so v7x's second TensorCore
    # is used and MXU M-occupancy exceeds 6 rows; at this toy size one program
    # is the right call.
    out_flat = pl.pallas_call(
        kernel,
        out_shape=jax.ShapeDtypeStruct((CN, P), x.dtype),
        grid=(1,),
        in_specs=[
            pl.BlockSpec((CN, P), lambda i: (0, 0)),     # x (flattened planes)
            pl.BlockSpec((P, P), lambda i: (0, 0)),      # K = D (x) D
            pl.BlockSpec((CN, CN), lambda i: (0, 0)),    # folded conv weights
            pl.BlockSpec((CN, 2), lambda i: (0, 0)),     # [gamma | beta] per row
        ],
        out_specs=pl.BlockSpec((CN, P), lambda i: (0, 0)),
        compiler_params=pltpu.CompilerParams(dimension_semantics=("arbitrary",)),
    )(x_flat, k, w_big, gb_rows)

    return out_flat.reshape(N, C, S, S)                  # free view


# Jit the wrapper so the tiny weight-derived prep fuses with the call instead of
# launching several separate XLA kernels per invocation.
fam_head_forward = jax.jit(_fam_head_forward, static_argnames=("eps",))


def fam_head_ref(x, dct, conv_w, gamma, beta, eps=1e-5):
    """Pure-JAX reference (mirrors the PyTorch forward in train mode)."""
    dct_t = dct.T
    xf = jnp.einsum("ij,ncjk,kl->ncil", dct, x, dct_t)
    cat = jnp.concatenate([xf, xf], axis=1)              # avg | max pools (identity)
    att = jnp.einsum("oi,nihw->nohw", conv_w, cat)       # 1x1 conv, no bias
    mean = att.mean(axis=(0, 2, 3), keepdims=True)
    var = att.var(axis=(0, 2, 3), keepdims=True)         # biased (train-mode BN)
    att = (att - mean) / jnp.sqrt(var + eps)
    att = att * gamma.reshape(1, -1, 1, 1) + beta.reshape(1, -1, 1, 1)
    att = jax.nn.sigmoid(att)
    y = jnp.einsum("ij,ncjk,kl->ncil", dct_t, att, dct)
    return jax.nn.sigmoid(y + x)


if __name__ == "__main__":
    SIZE = 16          # DCT size == spatial size
    N, C = 2, 3        # conv1 takes 6 = 2*C channels => C must be 3

    key = jax.random.PRNGKey(0)
    kx, kw = jax.random.split(key)

    x = jax.random.normal(kx, (N, C, SIZE, SIZE), dtype=jnp.float32)

    # conv1: Conv2d(6, 3, kernel_size=1, bias=False) -> weight (3, 6, 1, 1) ~ (3, 6)
    bound = 1.0 / np.sqrt(6.0)
    conv_w = jax.random.uniform(kw, (C, 2 * C), minval=-bound, maxval=bound,
                                dtype=jnp.float32)
    # bn1: BatchNorm2d(3) default init
    gamma = jnp.ones((C,), jnp.float32)
    beta = jnp.zeros((C,), jnp.float32)

    out = fam_head_forward(x, conv_w, gamma, beta)
    out = jax.block_until_ready(out)

    ref = fam_head_ref(x, jnp.asarray(dct_mat(SIZE)), conv_w, gamma, beta)
    err = float(jnp.max(jnp.abs(out - ref)))
    assert out.shape == (N, C, SIZE, SIZE)
    assert err < 1e-4, f"max abs error {err}"

    print("KERNEL_OK")
</pallas_src>

<mosaic_0001>
module attributes {stable_mosaic.version = 11 : i64} {
  func.func @_fam_head_kernel(%arg0: i32, %arg1: memref<6x256xf32, #tpu.memory_space<vmem>>, %arg2: memref<256x256xf32, #tpu.memory_space<vmem>>, %arg3: memref<6x6xf32, #tpu.memory_space<vmem>>, %arg4: memref<6x2xf32, #tpu.memory_space<vmem>>, %arg5: memref<6x256xf32, #tpu.memory_space<vmem>>) attributes {dimension_semantics = [#tpu.dimension_semantics<arbitrary>], iteration_bounds = array<i64: 1>, scalar_prefetch = 0 : i64, scratch_operands = 0 : i64, tpu.core_type = #tpu.core_type<tc>, window_params = [{pipeline_mode = #tpu.pipeline_mode<synchronous>, transform_indices = @transform_0, window_bounds = array<i64: 6, 256>}, {pipeline_mode = #tpu.pipeline_mode<synchronous>, transform_indices = @transform_1, window_bounds = array<i64: 256, 256>}, {pipeline_mode = #tpu.pipeline_mode<synchronous>, transform_indices = @transform_2, window_bounds = array<i64: 6, 6>}, {pipeline_mode = #tpu.pipeline_mode<synchronous>, transform_indices = @transform_3, window_bounds = array<i64: 6, 2>}, {pipeline_mode = #tpu.pipeline_mode<synchronous>, transform_indices = @transform_4, window_bounds = array<i64: 6, 256>}]} {
    %c0 = arith.constant 0 : index
    %c0_0 = arith.constant 0 : index
    %0 = vector.load %arg1[%c0, %c0_0] : memref<6x256xf32, #tpu.memory_space<vmem>>, vector<6x256xf32>
    %c0_1 = arith.constant 0 : index
    %c0_2 = arith.constant 0 : index
    %1 = vector.load %arg2[%c0_1, %c0_2] : memref<256x256xf32, #tpu.memory_space<vmem>>, vector<256x256xf32>
    %cst = arith.constant dense<0.000000e+00> : vector<6x256xf32>
    %2 = tpu.matmul %0, %1, %cst {dimension_numbers = #tpu.dot_dimension_numbers<[1], [1], [0], [0], [0, 0, 1, 0], [], []>} : vector<6x256xf32>, vector<256x256xf32>, vector<6x256xf32> -> vector<6x256xf32>
    %c0_3 = arith.constant 0 : index
    %c0_4 = arith.constant 0 : index
    %3 = vector.load %arg3[%c0_3, %c0_4] : memref<6x6xf32, #tpu.memory_space<vmem>>, vector<6x6xf32>
    %cst_5 = arith.constant dense<0.000000e+00> : vector<6x256xf32>
    %4 = tpu.matmul %3, %2, %cst_5 {dimension_numbers = #tpu.dot_dimension_numbers<[1], [0], [0], [1], [0, 0, 1, 1], [], []>} : vector<6x6xf32>, vector<6x256xf32>, vector<6x256xf32> -> vector<6x256xf32>
    %cst_6 = arith.constant dense<0.000000e+00> : vector<6xf32>
    %5 = vector.multi_reduction <add>, %4, %cst_6 [1] : vector<6x256xf32> to vector<6xf32>
    %6 = vector.shape_cast %5 : vector<6xf32> to vector<6x1xf32>
    %7 = vector.extract_strided_slice %6 {offsets = [0, 0], sizes = [3, 1], strides = [1, 1]} : vector<6x1xf32> to vector<3x1xf32>
    %8 = vector.extract_strided_slice %6 {offsets = [3, 0], sizes = [3, 1], strides = [1, 1]} : vector<6x1xf32> to vector<3x1xf32>
    %9 = arith.addf %7, %8 : vector<3x1xf32>
    %cst_7 = arith.constant 0.001953125 : f32
    %10 = vector.broadcast %cst_7 : f32 to vector<3x1xf32>
    %11 = arith.mulf %9, %10 : vector<3x1xf32>
    %12 = tpu.concatenate %11, %11 in 0 : vector<3x1xf32>, vector<3x1xf32> -> vector<6x1xf32>
    %13 = vector.broadcast %12 : vector<6x1xf32> to vector<6x256xf32>
    %14 = arith.subf %4, %13 : vector<6x256xf32>
    %15 = arith.mulf %14, %14 : vector<6x256xf32>
    %cst_8 = arith.constant dense<0.000000e+00> : vector<6xf32>
    %16 = vector.multi_reduction <add>, %15, %cst_8 [1] : vector<6x256xf32> to vector<6xf32>
    %17 = vector.shape_cast %16 : vector<6xf32> to vector<6x1xf32>
    %18 = vector.extract_strided_slice %17 {offsets = [0, 0], sizes = [3, 1], strides = [1, 1]} : vector<6x1xf32> to vector<3x1xf32>
    %19 = vector.extract_strided_slice %17 {offsets = [3, 0], sizes = [3, 1], strides = [1, 1]} : vector<6x1xf32> to vector<3x1xf32>
    %20 = arith.addf %18, %19 : vector<3x1xf32>
    %cst_9 = arith.constant 0.001953125 : f32
    %21 = vector.broadcast %cst_9 : f32 to vector<3x1xf32>
    %22 = arith.mulf %20, %21 : vector<3x1xf32>
    %23 = tpu.concatenate %22, %22 in 0 : vector<3x1xf32>, vector<3x1xf32> -> vector<6x1xf32>
    %cst_10 = arith.constant 9.99999974E-6 : f32
    %24 = vector.broadcast %cst_10 : f32 to vector<6x1xf32>
    %25 = arith.addf %23, %24 : vector<6x1xf32>
    %26 = math.rsqrt %25 : vector<6x1xf32>
    %c0_11 = arith.constant 0 : index
    %c0_12 = arith.constant 0 : index
    %27 = vector.load %arg4[%c0_11, %c0_12] : memref<6x2xf32, #tpu.memory_space<vmem>>, vector<6x1xf32>
    %28 = arith.mulf %26, %27 : vector<6x1xf32>
    %29 = vector.broadcast %28 : vector<6x1xf32> to vector<6x256xf32>
    %30 = arith.mulf %14, %29 : vector<6x256xf32>
    %c0_13 = arith.constant 0 : index
    %c1 = arith.constant 1 : index
    %31 = vector.load %arg4[%c0_13, %c1] : memref<6x2xf32, #tpu.memory_space<vmem>>, vector<6x1xf32>
    %32 = vector.broadcast %31 : vector<6x1xf32> to vector<6x256xf32>
    %33 = arith.addf %30, %32 : vector<6x256xf32>
    %34 = arith.negf %33 : vector<6x256xf32>
    %35 = math.exp %34 : vector<6x256xf32>
    %cst_14 = arith.constant 1.000000e+00 : f32
    %36 = vector.broadcast %cst_14 : f32 to vector<6x256xf32>
    %37 = arith.addf %36, %35 : vector<6x256xf32>
    %38 = arith.divf %36, %37 : vector<6x256xf32>
    %cst_15 = arith.constant dense<0.000000e+00> : vector<6x256xf32>
    %39 = tpu.matmul %38, %1, %cst_15 {dimension_numbers = #tpu.dot_dimension_numbers<[1], [0], [0], [1], [0, 0, 1, 1], [], []>} : vector<6x256xf32>, vector<256x256xf32>, vector<6x256xf32> -> vector<6x256xf32>
    %40 = arith.addf %39, %0 : vector<6x256xf32>
    %41 = arith.negf %40 : vector<6x256xf32>
    %42 = math.exp %41 : vector<6x256xf32>
    %cst_16 = arith.constant 1.000000e+00 : f32
    %43 = vector.broadcast %cst_16 : f32 to vector<6x256xf32>
    %44 = arith.addf %43, %42 : vector<6x256xf32>
    %45 = arith.divf %43, %44 : vector<6x256xf32>
    %c0_17 = arith.constant 0 : index
    %c0_18 = arith.constant 0 : index
    %46 = vector.load %arg5[%c0_17, %c0_18] : memref<6x256xf32, #tpu.memory_space<vmem>>, vector<6x256xf32>
    tpu.vector_store %arg5[%c0_17, %c0_18], %45 {strides = array<i32>} : memref<6x256xf32, #tpu.memory_space<vmem>>, vector<6x256xf32>,
    return
  }
  func.func @transform_0(%arg0: i32) -> (i32, i32) {
    %c0_i32 = arith.constant 0 : i32
    %c0_i32_0 = arith.constant 0 : i32
    %c0_i32_1 = arith.constant 0 : i32
    return %c0_i32, %c0_i32_0 : i32, i32
  }
  func.func @transform_1(%arg0: i32) -> (i32, i32) {
    %c0_i32 = arith.constant 0 : i32
    %c0_i32_0 = arith.constant 0 : i32
    %c0_i32_1 = arith.constant 0 : i32
    return %c0_i32, %c0_i32_0 : i32, i32
  }
  func.func @transform_2(%arg0: i32) -> (i32, i32) {
    %c0_i32 = arith.constant 0 : i32
    %c0_i32_0 = arith.constant 0 : i32
    %c0_i32_1 = arith.constant 0 : i32
    return %c0_i32, %c0_i32_0 : i32, i32
  }
  func.func @transform_3(%arg0: i32) -> (i32, i32) {
    %c0_i32 = arith.constant 0 : i32
    %c0_i32_0 = arith.constant 0 : i32
    %c0_i32_1 = arith.constant 0 : i32
    return %c0_i32, %c0_i32_0 : i32, i32
  }
  func.func @transform_4(%arg0: i32) -> (i32, i32) {
    %c0_i32 = arith.constant 0 : i32
    %c0_i32_0 = arith.constant 0 : i32
    %c0_i32_1 = arith.constant 0 : i32
    return %c0_i32, %c0_i32_0 : i32, i32
  }
}

</mosaic_0001>

<bundles_post_ra>
// kernel: tile.13
= control target key start
LH: loop header
LB: loop body
LE: loop exit
PB: predicated region body
PF: predicated region fallthrough
CT: control target
= control target key end

     0   :  { %s22_s0 = inlined_call_operand.vmem [shape: f32[3], index: 0, kind: input, shape index: {}]   ;;  %s23_s1 = inlined_call_operand.vmem [shape: f32[2,3], index: 1, kind: output, shape index: {}]  }
   0x1   :  { %v4_v0 = vld [vmem:[%s22_s0] ss:$0 sm:$0xff] }
   0x2   :  { %5 = vst [vmem:[%s23_s1] sm:$0x3] %v4_v0 }

// kernel: tile.18
= control target key start
LH: loop header
LB: loop body
LE: loop exit
PB: predicated region body
PF: predicated region fallthrough
CT: control target
= control target key end

     0   :  { %vm7_vm0 = vcmask 23552   ;;  %vm13_vm1 = vcmask 48152   ;;  %s39_s0 = inlined_call_operand.vmem [shape: f32[2,3], index: 0, kind: input, shape index: {}]   ;;  %s40_s1 = inlined_call_operand.vmem [shape: f32[6,1], index: 1, kind: output, shape index: {}]  }
   0x1   :  { %v4_v0 = vld [vmem:[%s39_s0] sm:$0x3]  ;;  %s22_s0 = smov 3  }
   0x2   :  { %5 = vst [vmem:[#allocation1] sm:$0x3] %v4_v0 }
   0x9   :  { %v10_v1 = vld [vmem:[#allocation1 + $0x1] sm:$0x1]   ;;  %v6_v2 = vld [vmem:[#allocation1] sm:$0x1]  }
   0xa   :  { %11 = vrot.lane.b32.xlu0 %v10_v1, %s22_s0  ;;  %8 = vst.msk [vmem:[#allocation0] sm:$0x1] %vm7_vm0, %v6_v2  }
  0x7c   :  { %v12_v3 = vpop.permute.xlu0 %11  }
  0x7d   :  { %14 = vst.msk [vmem:[#allocation0] sm:$0x1] %vm13_vm1, %v12_v3  }
  0x84   :  { %v17_v4 = vld [vmem:[#allocation0] sm:$0x1] }
  0x85   :  { %20 = vst [vmem:[%s40_s1] sm:$0x1] %v17_v4 }

// kernel: _fam_head_forward.1
= control target key start
LH: loop header
LB: loop body
LE: loop exit
PB: predicated region body
PF: predicated region fallthrough
CT: control target
= control target key end

     0   :  { %9 = vsyncpa [#allocation3], 0  ;;  %s520_s18 = smov [#allocation2]   ;;  %s521_s20 = smov 256   ;;  %s817_s0 = inlined_call_operand.vmem [shape: f32[6,256], index: 0, kind: input, shape index: {}]   ;;  %s818_s1 = inlined_call_operand.hbm [shape: f32[256,256], index: 1, kind: input, shape index: {}]   ;;  %s819_s2 = inlined_call_operand.vmem [shape: f32[6,6], index: 2, kind: input, shape index: {}]   ;;  %s820_s3 = inlined_call_operand.vmem [shape: f32[6,2], index: 3, kind: input, shape index: {}]   ;;  %s821_s4 = inlined_call_operand.vmem [shape: f32[6,256], index: 4, kind: output, shape index: {}]  }
   0x1   :  { %s16_s17 = sshll.u32 %s818_s1, 4  ;;  %s18_s19 = sshll.u32 %s520_s18, 4  ;;  %s17_s17 = int_to_ptr.hbm [resolvable:$true] %s16_s17  ;;  %s19_s19 = int_to_ptr.vmem [resolvable:$true] %s18_s19 }
   0x2   :  { %s522_s21 = smov 16  }
   0x3   :  { %24 = dma.hbm_to_vmem [thread:$0]  %s17_s17, 8192, %s19_s19, [#allocation3], %s521_s20, %s521_s20, %s522_s21  }
   0x4   :  { %518 = dma.done.wait [#allocation3], 8192  }
   0x5   :  { %519 = vsyncadd [#allocation3], 4294959104  ;;  %v553_v0 = vld [vmem:[#allocation2 + $0x1f0] sm:$0xff]  ;;  %v555_v1 = vld [vmem:[#allocation2 + $0x1f8] sm:$0xff]  ;;  %vm184_vm0 = vcmask 1045504   ;;  %vm180_vm1 = vcmask 48128  }
   0x6   :  { %139 = vmatpush.xpose.msra.mxu2 %v553_v0  ;;  %159 = vmatpush.xpose.msra.mxu3 %v555_v1  ;;  %v559_v2 = vld [vmem:[#allocation2 + $0xf0] sm:$0xff]  ;;  %v561_v3 = vld [vmem:[#allocation2 + $0xf8] sm:$0xff]  ;;  %v563_v4 = vld [vmem:[#allocation2 + $0x1e0] sm:$0xff]  ;;  %vm244_vm2 = vcmask 1042432  }
   0x7   :  { %v565_v5 = vld [vmem:[#allocation2 + $0x1e8] sm:$0xff]  ;;  %99 = vmatpush.xpose.msra.mxu0 %v559_v2  ;;  %119 = vmatpush.xpose.msra.mxu1 %v561_v3  ;;  %v569_v6 = vld [vmem:[#allocation2 + $0xe0] sm:$0xff]  ;;  %v575_v8 = vld [vmem:[#allocation2 + $0x1d0] sm:$0xff] }
   0x8   :  { %v571_v7 = vld [vmem:[#allocation2 + $0xe8] sm:$0xff]  ;;  %v577_v9 = vld [vmem:[#allocation2 + $0x1d8] sm:$0xff]  ;;  %v581_v10 = vld [vmem:[#allocation2 + $0xd0] sm:$0xff] }
   0x9   :  { %v583_v11 = vld [vmem:[#allocation2 + $0xd8] sm:$0xff]  ;;  %v587_v12 = vld [vmem:[#allocation2 + $0x1c0] sm:$0xff]  ;;  %v589_v13 = vld [vmem:[#allocation2 + $0x1c8] sm:$0xff] }
   0xa   :  { %140 = vmatpush.xpose.msra.mxu2 %v563_v4  ;;  %160 = vmatpush.xpose.msra.mxu3 %v565_v5  ;;  %v593_v14 = vld [vmem:[#allocation2 + $0xc0] sm:$0xff]  ;;  %v595_v15 = vld [vmem:[#allocation2 + $0xc8] sm:$0xff]  ;;  %v599_v16 = vld [vmem:[#allocation2 + $0x1b0] sm:$0xff] }
   0xb   :  { %100 = vmatpush.xpose.msra.mxu0 %v569_v6  ;;  %120 = vmatpush.xpose.msra.mxu1 %v571_v7  ;;  %v601_v17 = vld [vmem:[#allocation2 + $0x1b8] sm:$0xff]  ;;  %v605_v18 = vld [vmem:[#allocation2 + $0xb0] sm:$0xff]  ;;  %v611_v20 = vld [vmem:[#allocation2 + $0x1a0] sm:$0xff] }
   0xc   :  { %v607_v19 = vld [vmem:[#allocation2 + $0xb8] sm:$0xff]  ;;  %v613_v21 = vld [vmem:[#allocation2 + $0x1a8] sm:$0xff]  ;;  %v617_v22 = vld [vmem:[#allocation2 + $0xa0] sm:$0xff] }
   0xd   :  { %v619_v23 = vld [vmem:[#allocation2 + $0xa8] sm:$0xff]  ;;  %v623_v24 = vld [vmem:[#allocation2 + $0x190] sm:$0xff]  ;;  %v625_v25 = vld [vmem:[#allocation2 + $0x198] sm:$0xff] }
   0xe   :  { %141 = vmatpush.xpose.msra.mxu2 %v575_v8  ;;  %161 = vmatpush.xpose.msra.mxu3 %v577_v9  ;;  %v629_v26 = vld [vmem:[#allocation2 + $0x90] sm:$0xff]  ;;  %v631_v27 = vld [vmem:[#allocation2 + $0x98] sm:$0xff]  ;;  %v635_v28 = vld [vmem:[#allocation2 + $0x180] sm:$0xff] }
   0xf   :  { %101 = vmatpush.xpose.msra.mxu0 %v581_v10  ;;  %121 = vmatpush.xpose.msra.mxu1 %v583_v11  ;;  %v637_v29 = vld [vmem:[#allocation2 + $0x188] sm:$0xff]  ;;  %v641_v30 = vld [vmem:[#allocation2 + $0x80] sm:$0xff]  ;;  %v647_v32 = vld [vmem:[#allocation2 + $0x170] sm:$0xff] }
  0x10   :  { %v643_v31 = vld [vmem:[#allocation2 + $0x88] sm:$0xff]  ;;  %v649_v33 = vld [vmem:[#allocation2 + $0x178] sm:$0xff]  ;;  %v653_v34 = vld [vmem:[#allocation2 + $0x70] sm:$0xff] }
  0x11   :  { %v655_v35 = vld [vmem:[#allocation2 + $0x78] sm:$0xff]  ;;  %v659_v36 = vld [vmem:[#allocation2 + $0x160] sm:$0xff]  ;;  %v661_v37 = vld [vmem:[#allocation2 + $0x168] sm:$0xff] }
  0x12   :  { %142 = vmatpush.xpose.msra.mxu2 %v587_v12  ;;  %162 = vmatpush.xpose.msra.mxu3 %v589_v13  ;;  %v665_v38 = vld [vmem:[#allocation2 + $0x60] sm:$0xff]  ;;  %v667_v39 = vld [vmem:[#allocation2 + $0x68] sm:$0xff]  ;;  %v671_v40 = vld [vmem:[#allocation2 + $0x150] sm:$0xff] }
  0x13   :  { %102 = vmatpush.xpose.msra.mxu0 %v593_v14  ;;  %122 = vmatpush.xpose.msra.mxu1 %v595_v15  ;;  %v673_v41 = vld [vmem:[#allocation2 + $0x158] sm:$0xff]  ;;  %v677_v42 = vld [vmem:[#allocation2 + $0x50] sm:$0xff]  ;;  %v683_v44 = vld [vmem:[#allocation2 + $0x140] sm:$0xff] }
  0x14   :  { %v679_v43 = vld [vmem:[#allocation2 + $0x58] sm:$0xff]  ;;  %v685_v45 = vld [vmem:[#allocation2 + $0x148] sm:$0xff]  ;;  %v689_v46 = vld [vmem:[#allocation2 + $0x40] sm:$0xff] }
  0x15   :  { %v691_v47 = vld [vmem:[#allocation2 + $0x48] sm:$0xff]  ;;  %v695_v48 = vld [vmem:[#allocation2 + $0x130] sm:$0xff]  ;;  %v697_v49 = vld [vmem:[#allocation2 + $0x138] sm:$0xff] }
  0x16   :  { %143 = vmatpush.xpose.msra.mxu2 %v599_v16  ;;  %163 = vmatpush.xpose.msra.mxu3 %v601_v17  ;;  %v41_v50 = vld [vmem:[#allocation2 + $0x30] sm:$0xff]  ;;  %v701_v51 = vld [vmem:[#allocation2 + $0x38] sm:$0xff]  ;;  %v71_v52 = vld [vmem:[#allocation2 + $0x120] sm:$0xff] }
  0x17   :  { %103 = vmatpush.xpose.msra.mxu0 %v605_v18  ;;  %123 = vmatpush.xpose.msra.mxu1 %v607_v19  ;;  %v705_v53 = vld [vmem:[#allocation2 + $0x128] sm:$0xff]  ;;  %v39_v54 = vld [vmem:[#allocation2 + $0x20] sm:$0xff]  ;;  %v69_v56 = vld [vmem:[#allocation2 + $0x110] sm:$0xff] }
  0x18   :  { %824 = vst [vmem:[#allocation5_spill] sm:$0xff] %v705_v53  ;;  %v708_v55 = vld [vmem:[#allocation2 + $0x28] sm:$0xff]  ;;  %v711_v57 = vld [vmem:[#allocation2 + $0x118] sm:$0xff]  ;;  %v37_v58 = vld [vmem:[#allocation2 + $0x10] sm:$0xff] }
  0x19   :  { %825 = vst [vmem:[#allocation6_spill] sm:$0xff] %v711_v57  ;;  %v714_v59 = vld [vmem:[#allocation2 + $0x18] sm:$0xff]  ;;  %v67_v60 = vld [vmem:[#allocation2 + $0x100] sm:$0xff]  ;;  %v717_v61 = vld [vmem:[#allocation2 + $0x108] sm:$0xff] }
  0x1a   :  { %144 = vmatpush.xpose.msra.mxu2 %v611_v20  ;;  %164 = vmatpush.xpose.msra.mxu3 %v613_v21  ;;  %v35_v62 = vld [vmem:[#allocation2] sm:$0xff]  ;;  %v720_v63 = vld [vmem:[#allocation2 + $0x8] sm:$0xff] }
  0x1b   :  { %104 = vmatpush.xpose.msra.mxu0 %v617_v22  ;;  %124 = vmatpush.xpose.msra.mxu1 %v619_v23 }
  0x1e   :  { %145 = vmatpush.xpose.msra.mxu2 %v623_v24  ;;  %165 = vmatpush.xpose.msra.mxu3 %v625_v25 }
  0x1f   :  { %105 = vmatpush.xpose.msra.mxu0 %v629_v26  ;;  %125 = vmatpush.xpose.msra.mxu1 %v631_v27 }
  0x22   :  { %146 = vmatpush.xpose.msra.mxu2 %v635_v28  ;;  %166 = vmatpush.xpose.msra.mxu3 %v637_v29 }
  0x23   :  { %106 = vmatpush.xpose.msra.mxu0 %v641_v30  ;;  %126 = vmatpush.xpose.msra.mxu1 %v643_v31 }
  0x26   :  { %147 = vmatpush.xpose.msra.mxu2 %v647_v32  ;;  %167 = vmatpush.xpose.msra.mxu3 %v649_v33 }
  0x27   :  { %107 = vmatpush.xpose.msra.mxu0 %v653_v34  ;;  %127 = vmatpush.xpose.msra.mxu1 %v655_v35 }
  0x2a   :  { %148 = vmatpush.xpose.msra.mxu2 %v659_v36  ;;  %168 = vmatpush.xpose.msra.mxu3 %v661_v37 }
  0x2b   :  { %108 = vmatpush.xpose.msra.mxu0 %v665_v38  ;;  %128 = vmatpush.xpose.msra.mxu1 %v667_v39 }
  0x2e   :  { %149 = vmatpush.xpose.msra.mxu2 %v671_v40  ;;  %169 = vmatpush.xpose.msra.mxu3 %v673_v41 }
  0x2f   :  { %109 = vmatpush.xpose.msra.mxu0 %v677_v42  ;;  %129 = vmatpush.xpose.msra.mxu1 %v679_v43 }
  0x32   :  { %150 = vmatpush.xpose.msra.mxu2 %v683_v44  ;;  %170 = vmatpush.xpose.msra.mxu3 %v685_v45 }
  0x33   :  { %110 = vmatpush.xpose.msra.mxu0 %v689_v46  ;;  %130 = vmatpush.xpose.msra.mxu1 %v691_v47 }
  0x36   :  { %151 = vmatpush.xpose.msra.mxu2 %v695_v48  ;;  %171 = vmatpush.xpose.msra.mxu3 %v697_v49 }
  0x37   :  { %111 = vmatpush.xpose.msra.mxu0 %v41_v50  ;;  %131 = vmatpush.xpose.msra.mxu1 %v701_v51 }
  0x3a   :  { %152 = vmatpush.xpose.msra.mxu2 %v71_v52  ;;  %172 = vmatpush.xpose.msra.mxu3 %v705_v53  ;;  %v726_v53 = vld [vmem:[%s817_s0] sm:$0x3f] }
  0x3b   :  { %112 = vmatpush.xpose.msra.mxu0 %v39_v54  ;;  %132 = vmatpush.xpose.msra.mxu1 %v708_v55 }
  0x3e   :  { %153 = vmatpush.xpose.msra.mxu2 %v69_v56  ;;  %173 = vmatpush.xpose.msra.mxu3 %v711_v57  ;;  %v731_v57 = vld [vmem:[%s817_s0 + $0x8] sm:$0x3f] }
  0x3f   :  { %113 = vmatpush.xpose.msra.mxu0 %v37_v58  ;;  %133 = vmatpush.xpose.msra.mxu1 %v714_v59 }
  0x42   :  { %154 = vmatpush.xpose.msra.mxu2 %v67_v60  ;;  %174 = vmatpush.xpose.msra.mxu3 %v717_v61 }
  0x43   :  { %114 = vmatpush.xpose.msra.mxu0 %v35_v62  ;;  %134 = vmatpush.xpose.msra.mxu1 %v720_v63 }
  0x45   :  { %155 = vmatmul.f32.vlgmr.msra.gmra.mxu2 %v726_v53  ;;  %175 = vmatmul.f32.vlgmr.msra.gmra.mxu3 %v731_v57 }
  0x46   :  { %334 = vmatpush.msrb.mxu2 %v559_v2  ;;  %354 = vmatpush.msrb.mxu3 %v553_v0 }
  0x47   :  { %115 = vmatmul.f32.vlgmr.msra.gmra.mxu0 %v726_v53  ;;  %135 = vmatmul.f32.vlgmr.msra.gmra.mxu1 %v731_v57 }
  0x48   :  { %335 = vmatpush.msrb.mxu2 %v569_v6  ;;  %355 = vmatpush.msrb.mxu3 %v563_v4  ;;  %v179_v6 = vld [vmem:[%s819_s2] sm:$0x3f] }
  0x4a   :  { %336 = vmatpush.msrb.mxu2 %v581_v10  ;;  %356 = vmatpush.msrb.mxu3 %v575_v8 }
  0x4c   :  { %337 = vmatpush.msrb.mxu2 %v593_v14  ;;  %357 = vmatpush.msrb.mxu3 %v587_v12  ;;  %v523_v14 = vmov 0  }
  0x4d   :  { %472 = vset.pattern.permute.xlu0 %v523_v14  ;;  %473 = vset.pattern.permute.xlu1 %v523_v14 }
  0x4e   :  { %338 = vmatpush.msrb.mxu2 %v605_v18  ;;  %358 = vmatpush.msrb.mxu3 %v599_v16 }
  0x50   :  { %339 = vmatpush.msrb.mxu2 %v617_v22  ;;  %359 = vmatpush.msrb.mxu3 %v611_v20 }
  0x52   :  { %340 = vmatpush.msrb.mxu2 %v629_v26  ;;  %360 = vmatpush.msrb.mxu3 %v623_v24 }
  0x54   :  { %341 = vmatpush.msrb.mxu2 %v641_v30  ;;  %361 = vmatpush.msrb.mxu3 %v635_v28 }
  0x56   :  { %342 = vmatpush.msrb.mxu2 %v653_v34  ;;  %362 = vmatpush.msrb.mxu3 %v647_v32  ;;  %v524_v32 = vmov 1  }
  0x57   :  { %474 = vset.pattern.permute.xlu2 %v524_v32 }
  0x58   :  { %343 = vmatpush.msrb.mxu2 %v665_v38  ;;  %363 = vmatpush.msrb.mxu3 %v659_v36 }
  0x5a   :  { %344 = vmatpush.msrb.mxu2 %v677_v42  ;;  %364 = vmatpush.msrb.mxu3 %v671_v40 }
  0x5c   :  { %345 = vmatpush.msrb.mxu2 %v689_v46  ;;  %365 = vmatpush.msrb.mxu3 %v683_v44 }
  0x5e   :  { %346 = vmatpush.msrb.mxu2 %v41_v50  ;;  %366 = vmatpush.msrb.mxu3 %v695_v48 }
  0x60   :  { %347 = vmatpush.msrb.mxu2 %v39_v54  ;;  %367 = vmatpush.msrb.mxu3 %v71_v52 }
  0x62   :  { %348 = vmatpush.msrb.mxu2 %v37_v58  ;;  %368 = vmatpush.msrb.mxu3 %v69_v56 }
  0x64   :  { %349 = vmatpush.msrb.mxu2 %v35_v62  ;;  %369 = vmatpush.msrb.mxu3 %v67_v60 }
  0xc4   :  { %v116_v0 = vpop.f32.mrf.mxu0  ;;  %v136_v2 = vpop.f32.mrf.mxu1 }
  0xc5   :  { %v137_v4 = vadd.f32 %v136_v2, %v116_v0 }
  0xc7   :  { %459 = vmatpush.msk.msrb.mxu0 %vm184_vm0, %v137_v4 }
  0xc8   :  { %460 = vmatmul.msk.f32.vlgmr.msrb.gmra.mxu0 %vm180_vm1, %v179_v6  ;;  %v156_v8 = vpop.f32.mrf.mxu2  ;;  %v176_v10 = vpop.f32.mrf.mxu3 }
  0xc9   :  { %374 = vmatpush.msra.mxu0 %v561_v3  ;;  %v177_v12 = vadd.f32 %v176_v10, %v156_v8  ;;  %v827_v3 = vld [vmem:[#allocation6_spill] sm:$0xff] }
  0xcb   :  { %375 = vmatpush.msra.mxu0 %v571_v7  ;;  %461 = vmatpush.msk.msrb.mxu1 %vm184_vm0, %v177_v12 }
  0xcc   :  { %462 = vmatmul.msk.f32.vlgmr.msrb.gmra.mxu1 %vm180_vm1, %v179_v6 }
  0xcd   :  { %376 = vmatpush.msra.mxu0 %v583_v11  ;;  %394 = vmatpush.msra.mxu1 %v555_v1  ;;  %v826_v1 = vld [vmem:[#allocation5_spill] sm:$0xff] }
  0xcf   :  { %377 = vmatpush.msra.mxu0 %v595_v15  ;;  %395 = vmatpush.msra.mxu1 %v565_v5 }
  0xd1   :  { %378 = vmatpush.msra.mxu0 %v607_v19  ;;  %396 = vmatpush.msra.mxu1 %v577_v9 }
  0xd3   :  { %379 = vmatpush.msra.mxu0 %v619_v23  ;;  %397 = vmatpush.msra.mxu1 %v589_v13 }
  0xd5   :  { %380 = vmatpush.msra.mxu0 %v631_v27  ;;  %398 = vmatpush.msra.mxu1 %v601_v17 }
  0xd7   :  { %381 = vmatpush.msra.mxu0 %v643_v31  ;;  %399 = vmatpush.msra.mxu1 %v613_v21  ;;  %v280_v31 = vld [vmem:[%s820_s3] sm:$0x3f] }
  0xd8   :  { %291 = vperm.xlu2 %474, %v280_v31  }
  0xd9   :  { %382 = vmatpush.msra.mxu0 %v655_v35  ;;  %400 = vmatpush.msra.mxu1 %v625_v25 }
  0xdb   :  { %383 = vmatpush.msra.mxu0 %v667_v39  ;;  %401 = vmatpush.msra.mxu1 %v637_v29 }
  0xdd   :  { %384 = vmatpush.msra.mxu0 %v679_v43  ;;  %402 = vmatpush.msra.mxu1 %v649_v33 }
  0xdf   :  { %385 = vmatpush.msra.mxu0 %v691_v47  ;;  %403 = vmatpush.msra.mxu1 %v661_v37 }
  0xe1   :  { %386 = vmatpush.msra.mxu0 %v701_v51  ;;  %404 = vmatpush.msra.mxu1 %v673_v41 }
  0xe3   :  { %387 = vmatpush.msra.mxu0 %v708_v55  ;;  %405 = vmatpush.msra.mxu1 %v685_v45 }
  0xe5   :  { %388 = vmatpush.msra.mxu0 %v714_v59  ;;  %406 = vmatpush.msra.mxu1 %v697_v49 }
  0xe7   :  { %389 = vmatpush.msra.mxu0 %v720_v63  ;;  %407 = vmatpush.msra.mxu1 %v826_v1 }
  0xe9   :  { %408 = vmatpush.msra.mxu1 %v827_v3 }
  0xeb   :  { %409 = vmatpush.msra.mxu1 %v717_v61 }
 0x132   :  { %v292_v47 = vpop.permute.xlu2 %291 }
 0x145   :  { %v208_v5 = vpop.f32.mrf.mxu0 }
 0x146   :  { %v231_v7 = vsel %vm184_vm0, %v208_v5, 0.0 }
 0x149   :  { %v228_v9 = vpop.f32.mrf.mxu1 }
 0x14a   :  { %v232_v11 = vsel %vm184_vm0, %v228_v9, 0.0 }
 0x14b   :  { %v233_v13 = vadd.f32 %v232_v11, %v231_v7 }
 0x14d   :  { %234 = vadd.xlane.f32.xlu0 %v233_v13 }
 0x1c0   :  { %v235_v15 = vpop.xlane.xlu0 %234 }
 0x1c1   :  { %v237_v16 = vrot.slane %v235_v15, 3 }
 0x1c3   :  { %v239_v17 = vadd.f32 %v237_v16, %v235_v15 }
 0x1c5   :  { %v240_v18 = vmul.f32 0.001953125, %v239_v17 }
 0x1c7   :  { %v242_v19 = vrot.slane %v240_v18, 5 }
 0x1c9   :  { %v245_v20 = vsel %vm244_vm2, %v240_v18, %v242_v19 }
 0x1ca   :  { %248 = vperm.xlu0 %472, %v245_v20  }
 0x1d2   :  { %475 = vset.pattern.permute.xlu0 %v524_v32 }
 0x23c   :  { %v249_v21 = vpop.permute.xlu0 %248 }
 0x23d   :  { %v251_v22 = vsub.f32 %v208_v5, %v249_v21  ;;  %v252_v23 = vsub.f32 %v228_v9, %v249_v21 }
 0x23f   :  { %v253_v24 = vmul.f32 %v251_v22, %v251_v22  ;;  %v254_v25 = vmul.f32 %v252_v23, %v252_v23 }
 0x241   :  { %v255_v26 = vsel %vm184_vm0, %v253_v24, 0.0  ;;  %v256_v27 = vsel %vm184_vm0, %v254_v25, 0.0 }
 0x242   :  { %v257_v28 = vadd.f32 %v256_v27, %v255_v26 }
 0x244   :  { %258 = vadd.xlane.f32.xlu1 %v257_v28 }
 0x2b7   :  { %v259_v29 = vpop.xlane.xlu1 %258 }
 0x2b8   :  { %v261_v30 = vrot.slane %v259_v29, 3 }
 0x2ba   :  { %v263_v33 = vadd.f32 %v261_v30, %v259_v29 }
 0x2bc   :  { %v264_v34 = vmul.f32 0.001953125, %v263_v33 }
 0x2be   :  { %v266_v35 = vrot.slane %v264_v34, 5 }
 0x2c0   :  { %v268_v36 = vsel %vm244_vm2, %v264_v34, %v266_v35 }
 0x2c1   :  { %v269_v37 = vadd.f32 1e-05, %v268_v36 }
 0x2c3   :  { %476 = vrsqrt.f32 %v269_v37  ;;  %vm276_vm4 = vweird.f32 %v269_v37 }
 0x2c9   :  { %v477_v38 = vpop.eup %476 }
 0x2ca   :  { %v271_v39 = vmul.f32 %v477_v38, %v269_v37  ;;  %vm277_vm3 = vweird.f32 %v477_v38 }
 0x2cb   :  { %vm278_vm5 = vmor %vm276_vm4, %vm277_vm3 }
 0x2cc   :  { %v272_v40 = vmul.f32 %v477_v38, %v271_v39 }
 0x2ce   :  { %v273_v41 = vmul.f32 0.5, %v272_v40 }
 0x2d0   :  { %v274_v42 = vsub.f32 1.5, %v273_v41 }
 0x2d2   :  { %v275_v43 = vmul.f32 %v477_v38, %v274_v42 }
 0x2d4   :  { %v279_v44 = vsel %vm278_vm5, %v477_v38, %v275_v43 }
 0x2d5   :  { %v281_v45 = vmul.f32 %v280_v31, %v279_v44 }
 0x2d7   :  { %284 = vperm.xlu1 %473, %v281_v45  }
 0x349   :  { %v285_v46 = vpop.permute.xlu1 %284 }
 0x34a   :  { %v287_v48 = vmul.f32 %v285_v46, %v251_v22  ;;  %v288_v49 = vmul.f32 %v285_v46, %v252_v23 }
 0x34c   :  { %v294_v50 = vadd.f32 %v292_v47, %v287_v48  ;;  %v295_v51 = vadd.f32 %v292_v47, %v288_v49 }
 0x34e   :  { %v463_v52 = vmul.f32 -1.442695, %v294_v50  ;;  %v464_v54 = vmul.f32 -1.442695, %v295_v51 }
 0x350   :  { %478 = vpow2.f32 %v463_v52 }
 0x351   :  { %480 = vpow2.f32 %v464_v54 }
 0x356   :  { %v479_v55 = vpop.eup %478 }
 0x357   :  { %v481_v56 = vpop.eup %480  ;;  %v302_v58 = vadd.f32 1.0, %v479_v55 }
 0x358   :  { %v303_v59 = vadd.f32 1.0, %v481_v56 }
 0x359   :  { %482 = vrcp.f32 %v302_v58  ;;  %v315_v2 = vand.u32 2147483648, %v302_v58  ;;  %v313_v8 = vand.u32 2147483647, %v302_v58  ;;  %vm309_vm8 = vweird.f32 %v302_v58 }
 0x35a   :  { %484 = vrcp.f32 %v303_v59  ;;  %v330_v10 = vand.u32 2147483648, %v303_v59  ;;  %v328_v1 = vand.u32 2147483647, %v303_v59  ;;  %vm324_vm10 = vweird.f32 %v303_v59 }
 0x35b   :  { %v316_v5 = vor.u32 1.1754944e-38, %v315_v2  ;;  %vm314_vm11 = vcmp.eq.f32.partialorder %v313_v8, 8.507059e+37 }
 0x35c   :  { %v331_v11 = vor.u32 1.1754944e-38, %v330_v10  ;;  %vm329_vm13 = vcmp.eq.f32.partialorder %v328_v1, 8.507059e+37 }
 0x35f   :  { %v483_v60 = vpop.eup %482 }
 0x360   :  { %v485_v61 = vpop.eup %484  ;;  %v305_v62 = vmul.f32 %v483_v60, %v302_v58  ;;  %vm310_vm6 = vweird.f32 %v483_v60 }
 0x361   :  { %v320_v63 = vmul.f32 %v485_v61, %v303_v59  ;;  %vm325_vm7 = vweird.f32 %v485_v61  ;;  %vm311_vm9 = vmor %vm309_vm8, %vm310_vm6 }
 0x362   :  { %v306_v0 = vsub.f32 1.0, %v305_v62  ;;  %vm326_vm12 = vmor %vm324_vm10, %vm325_vm7 }
 0x363   :  { %v321_v4 = vsub.f32 1.0, %v320_v63 }
 0x364   :  { %v307_v6 = vmul.f32 %v483_v60, %v306_v0 }
 0x365   :  { %v322_v12 = vmul.f32 %v485_v61, %v321_v4 }
 0x366   :  { %v308_v3 = vadd.f32 %v483_v60, %v307_v6 }
 0x367   :  { %v323_v7 = vadd.f32 %v485_v61, %v322_v12 }
 0x368   :  { %v312_v9 = vsel %vm311_vm9, %v483_v60, %v308_v3 }
 0x369   :  { %v317_v13 = vsel %vm314_vm11, %v316_v5, %v312_v9  ;;  %v327_v14 = vsel %vm326_vm12, %v485_v61, %v323_v7 }
 0x36a   :  { %350 = vmatmul.f32.vlgmr.msrb.gmra.mxu2 %v317_v13  ;;  %v332_v15 = vsel %vm329_vm13, %v331_v11, %v327_v14  ;;  %390 = vmatmul.f32.vlgmr.msra.gmra.mxu0 %v317_v13 }
 0x36b   :  { %370 = vmatmul.f32.vlgmr.msrb.gmra.mxu3 %v332_v15  ;;  %410 = vmatmul.f32.vlgmr.msra.gmra.mxu1 %v332_v15 }
 0x3e7   :  { %v391_v16 = vpop.f32.mrf.mxu0 }
 0x3e8   :  { %v392_v17 = vadd.f32 %v391_v16, %v731_v57  ;;  %v411_v18 = vpop.f32.mrf.mxu1 }
 0x3ea   :  { %v412_v19 = vadd.f32 %v411_v18, %v392_v17 }
 0x3ec   :  { %v466_v20 = vmul.f32 -1.442695, %v412_v19 }
 0x3ed   :  { %v351_v21 = vpop.f32.mrf.mxu2 }
 0x3ee   :  { %486 = vpow2.f32 %v466_v20  ;;  %v352_v22 = vadd.f32 %v351_v21, %v726_v53  ;;  %v371_v23 = vpop.f32.mrf.mxu3 }
 0x3f0   :  { %v372_v24 = vadd.f32 %v371_v23, %v352_v22 }
 0x3f2   :  { %v465_v25 = vmul.f32 -1.442695, %v372_v24 }
 0x3f4   :  { %v487_v26 = vpop.eup %486  ;;  %488 = vpow2.f32 %v465_v25 }
 0x3f5   :  { %v421_v27 = vadd.f32 1.0, %v487_v26 }
 0x3f7   :  { %490 = vrcp.f32 %v421_v27  ;;  %v448_v32 = vand.u32 2147483648, %v421_v27  ;;  %v446_v34 = vand.u32 2147483647, %v421_v27  ;;  %vm442_vm15 = vweird.f32 %v421_v27 }
 0x3f9   :  { %v449_v37 = vor.u32 1.1754944e-38, %v448_v32  ;;  %vm447_vm1 = vcmp.eq.f32.partialorder %v446_v34, 8.507059e+37 }
 0x3fa   :  { %v489_v28 = vpop.eup %488 }
 0x3fb   :  { %v420_v29 = vadd.f32 1.0, %v489_v28 }
 0x3fd   :  { %v491_v30 = vpop.eup %490  ;;  %492 = vrcp.f32 %v420_v29  ;;  %v433_v41 = vand.u32 2147483648, %v420_v29  ;;  %v431_v43 = vand.u32 2147483647, %v420_v29  ;;  %vm427_vm3 = vweird.f32 %v420_v29 }
 0x3fe   :  { %v438_v31 = vmul.f32 %v491_v30, %v421_v27  ;;  %vm443_vm14 = vweird.f32 %v491_v30 }
 0x3ff   :  { %vm444_vm0 = vmor %vm442_vm15, %vm443_vm14  ;;  %v434_v45 = vor.u32 1.1754944e-38, %v433_v41  ;;  %vm432_vm5 = vcmp.eq.f32.partialorder %v431_v43, 8.507059e+37 }
 0x400   :  { %v439_v57 = vsub.f32 1.0, %v438_v31 }
 0x402   :  { %v440_v33 = vmul.f32 %v491_v30, %v439_v57 }
 0x403   :  { %v493_v35 = vpop.eup %492 }
 0x404   :  { %v441_v36 = vadd.f32 %v491_v30, %v440_v33  ;;  %v423_v53 = vmul.f32 %v493_v35, %v420_v29  ;;  %vm428_vm2 = vweird.f32 %v493_v35 }
 0x405   :  { %vm429_vm4 = vmor %vm427_vm3, %vm428_vm2 }
 0x406   :  { %v445_v38 = vsel %vm444_vm0, %v491_v30, %v441_v36  ;;  %v424_v39 = vsub.f32 1.0, %v423_v53 }
 0x407   :  { %v450_v40 = vsel %vm447_vm1, %v449_v37, %v445_v38 }
 0x408   :  { %453 = vst [vmem:[%s821_s4 + $0x8] sm:$0x3f] %v450_v40  ;;  %v425_v42 = vmul.f32 %v493_v35, %v424_v39 }
 0x40a   :  { %v426_v44 = vadd.f32 %v493_v35, %v425_v42 }
 0x40c   :  { %v430_v46 = vsel %vm429_vm4, %v493_v35, %v426_v44 }
 0x40d   :  { %v435_v47 = vsel %vm432_vm5, %v434_v45, %v430_v46 }
 0x40e   :  { %452 = vst [vmem:[%s821_s4] sm:$0x3f] %v435_v47 }
 0x40f   :  { %458 = vsyncpa [#allocation3], 1 }

</bundles_post_ra>
